<compile_context>
chip_gen: v7x
topology: tpu7x:2x2x1
jax: 0.10.0
libtpu: 0.0.40
codegen_flags: <defaults>
</compile_context>

<pallas_src>
import functools

import jax
import jax.numpy as jnp
from jax import lax
from jax.experimental import pallas as pl
from jax.experimental.pallas import tpu as pltpu


def _round_up(a, b):
    return (a + b - 1) // b * b


def _proj_kernel(x_ref, wab_ref, wp_ref, bias_ref, gx_ref, a_ref, b_ref, *,
                 ci_pad, n_valid, tb):
    """Per-row projections for one (tb, Cin) row block of x.

    Outputs:
      gx : (tb, ci_pad) bf16  g-projection (padded cols zero, pad rows zeroed)
      a  : (tb, 1)      f32   theta-side scalar (conv weight + 1/N folded in)
      b  : (1, tb)      f32   phi-side scalar, already lane-major
    """
    x = x_ref[...]                                                # (tb, Cin)
    bias = bias_ref[...]                                          # (1, ci_pad+2)

    # Fused projection: cols [0:ci) -> g_x, col ci_pad -> theta scalar.
    proj = jnp.dot(x, wab_ref[...], preferred_element_type=jnp.float32)
    proj = proj + bias[:, :ci_pad + 1]                            # (tb, ci_pad+1)

    # Zero g_x on padded rows so padded keys contribute nothing to z.
    rows = pl.program_id(0) * tb + lax.broadcasted_iota(
        jnp.int32, (tb, ci_pad), 0)
    gx = jnp.where(rows < n_valid, proj[:, :ci_pad], 0.0)
    gx_ref[...] = gx.astype(jnp.bfloat16)                         # bf16 pack

    a_ref[...] = proj[:, ci_pad:ci_pad + 1]                       # (tb, 1)

    # Phi-side scalar produced directly in lane-major (1, tb) layout (contract
    # the Cin axis), so NO (tk,1)->(1,tk) relayout is ever needed downstream.
    # This M=1 matmul runs once per row block in the prologue pass, not inside
    # the O(N^2) inner loop.
    b = lax.dot_general(wp_ref[...], x,
                        dimension_numbers=(((1,), (1,)), ((), ())),
                        preferred_element_type=jnp.float32)       # (1, tb)
    b_ref[...] = b + bias[:, ci_pad + 1:ci_pad + 2]


def _relation_kernel(gx_ref, a_ref, b_ref, z_ref, acc_ref):
    """One (row-tile i, key-tile k) step of z += relu(a_i + b_k) @ g_x_k."""
    k = pl.program_id(1)

    @pl.when(k == 0)
    def _init():
        acc_ref[...] = jnp.zeros_like(acc_ref)

    # (tm, tk) tile of the relation map.  1/N is pre-folded into a/b, so this
    # is a single f32 VPU add + relu (elementwise kept f32 for v5e; bf16 only
    # at the MXU inputs).
    f = jnp.maximum(a_ref[...] + b_ref[...], 0.0)                 # (tm, tk) f32
    acc_ref[...] += jnp.dot(f.astype(jnp.bfloat16), gx_ref[...],
                            preferred_element_type=jnp.float32)   # (tm, ci_pad)

    @pl.when(k == pl.num_programs(1) - 1)
    def _store():
        z_ref[...] = acc_ref[...]


def relation_between_multi(x, params):
    """Forward of RelationBetweenMulti.  x: (N, C_in) f32 -> z: (N, C_i) f32."""
    n, cin = x.shape
    wg, bg = params["wg"], params["bg"]          # (Ci, Cin), (Ci,)
    wt, bt = params["wt"], params["bt"]
    wp, bp = params["wp"], params["bp"]
    wconv = params["wconv"]                      # (1, 2*Ci, 1, 1), no bias
    ci = wg.shape[0]
    inv_n = jnp.float32(1.0 / n)

    wct = wconv[0, :ci, 0, 0]                    # (Ci,)  theta half of the conv
    wcp = wconv[0, ci:, 0, 0]                    # (Ci,)  phi half of the conv

    # Trace-time folds (valid because relu(x)/n == relu(x/n), n > 0).
    wt_fold = (wt.T @ wct) * inv_n               # (Cin,)
    bt_fold = jnp.dot(bt, wct) * inv_n           # scalar
    wp_fold = (wp.T @ wcp) * inv_n               # (Cin,)
    bp_fold = jnp.dot(bp, wcp) * inv_n           # scalar

    # Lane-dense padded output width: z / g_x live in a 128-wide slab so f@g_x
    # gets full-lane (unmasked) stores; real columns are sliced at the end.
    ci_pad = max(128, _round_up(ci, 128))

    # Row/key tiling.  (tm, tk) f32 map tile + bf16 copy + bf16 g_x tiles +
    # (tm, ci_pad) f32 accumulator stays ~2 MiB -> fits the default scoped
    # VMEM on every generation (16 MiB v5e, 32 MiB v6e/v7x), no vmem_limit
    # override needed.
    if n <= 512:
        n_pad = _round_up(n, 128)
        tm = tk = n_pad                           # single tile
    else:
        n_pad = _round_up(n, 512)
        tm = tk = 512
    tb = tk                                       # projection row block

    x_pad = jnp.pad(x.astype(jnp.float32), ((0, n_pad - n), (0, 0)))

    # Fused projection weights: cols [0:ci) -> g, col ci_pad -> theta scalar.
    wab = jnp.zeros((cin, ci_pad + 1), jnp.float32)
    wab = wab.at[:, :ci].set(wg.T.astype(jnp.float32))
    wab = wab.at[:, ci_pad].set(wt_fold)
    wp_row = wp_fold[None, :]                                     # (1, Cin)
    bias = jnp.zeros((1, ci_pad + 2), jnp.float32)
    bias = bias.at[0, :ci].set(bg.astype(jnp.float32))
    bias = bias.at[0, ci_pad].set(bt_fold)
    bias = bias.at[0, ci_pad + 1].set(bp_fold)

    # ---- pass 1: per-row projections (g_x, a, b), computed once for all N ---
    gx, a_col, b_row = pl.pallas_call(
        functools.partial(_proj_kernel, ci_pad=ci_pad, n_valid=n, tb=tb),
        out_shape=(jax.ShapeDtypeStruct((n_pad, ci_pad), jnp.bfloat16),
                   jax.ShapeDtypeStruct((n_pad, 1), jnp.float32),
                   jax.ShapeDtypeStruct((1, n_pad), jnp.float32)),
        grid=(n_pad // tb,),
        in_specs=[pl.BlockSpec((tb, cin), lambda i: (i, 0)),
                  pl.BlockSpec((cin, ci_pad + 1), lambda i: (0, 0)),
                  pl.BlockSpec((1, cin), lambda i: (0, 0)),
                  pl.BlockSpec((1, ci_pad + 2), lambda i: (0, 0))],
        out_specs=(pl.BlockSpec((tb, ci_pad), lambda i: (i, 0)),
                   pl.BlockSpec((tb, 1), lambda i: (i, 0)),
                   pl.BlockSpec((1, tb), lambda i: (0, i))),
        compiler_params=pltpu.CompilerParams(
            dimension_semantics=("parallel",)),
        cost_estimate=pl.CostEstimate(
            flops=2 * n_pad * cin * (ci_pad + 2),
            transcendentals=0,
            bytes_accessed=n_pad * (cin + ci_pad) * 4),
    )(x_pad, wab, wp_row, bias)

    # ---- pass 2: tiled relation map + accumulation ---------------------------
    ni, nk = n_pad // tm, n_pad // tk
    z_pad = pl.pallas_call(
        _relation_kernel,
        out_shape=jax.ShapeDtypeStruct((n_pad, ci_pad), jnp.float32),
        grid=(ni, nk),
        in_specs=[pl.BlockSpec((tk, ci_pad), lambda i, k: (k, 0)),
                  pl.BlockSpec((tm, 1), lambda i, k: (i, 0)),
                  pl.BlockSpec((1, tk), lambda i, k: (0, k))],
        out_specs=pl.BlockSpec((tm, ci_pad), lambda i, k: (i, 0)),
        scratch_shapes=[pltpu.VMEM((tm, ci_pad), jnp.float32)],
        compiler_params=pltpu.CompilerParams(
            dimension_semantics=("parallel", "arbitrary")),
        cost_estimate=pl.CostEstimate(
            flops=2 * n_pad * n_pad * ci_pad,
            transcendentals=0,
            bytes_accessed=(ni * n_pad * ci_pad * 2      # g_x re-streamed per i
                            + n_pad * 8                  # a + b
                            + n_pad * ci_pad * 4)),      # z
    )(gx, a_col, b_row)

    # TODO(synk): batch several relation heads / instances into one call so the
    # useful (un-padded) output width itself becomes a multiple of 128 and the
    # per-call launch overhead is amortized at tiny N (the VPU-built relu map
    # is then shared across a wider MXU output).
    return z_pad[:n, :ci]


def init_params(key, in_channels, unit_nums):
    """Matches the module init: normal(0, 0.01) weights, zero biases."""
    ci = in_channels // unit_nums
    if ci == 0:
        ci = 1
    kg, kt, kp, kc = jax.random.split(key, 4)
    std = 0.01
    return {
        "wg": jax.random.normal(kg, (ci, in_channels), jnp.float32) * std,
        "bg": jnp.zeros((ci,), jnp.float32),
        "wt": jax.random.normal(kt, (ci, in_channels), jnp.float32) * std,
        "bt": jnp.zeros((ci,), jnp.float32),
        "wp": jax.random.normal(kp, (ci, in_channels), jnp.float32) * std,
        "bp": jnp.zeros((ci,), jnp.float32),
        "wconv": jax.random.normal(kc, (1, 2 * ci, 1, 1), jnp.float32) * std,
    }


def reference(x, params):
    """Pure-JAX transcription of the original PyTorch forward (verification)."""
    wg, bg = params["wg"], params["bg"]
    wt, bt = params["wt"], params["bt"]
    wp, bp = params["wp"], params["bp"]
    wconv = params["wconv"]
    n = x.shape[0]
    g_x = x @ wg.T + bg
    theta = x @ wt.T + bt                                        # (N, Ci)
    phi = x @ wp.T + bp                                          # (N, Ci)
    theta_x = jnp.tile(theta.T[:, :, None], (1, 1, n))           # (Ci, N, N)
    phi_x = jnp.tile(phi.T[:, None, :], (1, n, 1))               # (Ci, N, N)
    concat = jnp.concatenate([theta_x, phi_x], axis=0)[None]     # (1, 2Ci, N, N)
    f = lax.conv_general_dilated(
        concat, wconv, window_strides=(1, 1), padding="VALID",
        dimension_numbers=("NCHW", "OIHW", "NCHW"))
    f = jax.nn.relu(f).reshape(n, n)
    return (f / n) @ g_x


if __name__ == "__main__":
    key = jax.random.PRNGKey(0)
    k_x, k_p = jax.random.split(key)

    N = 8               # number of relation units (rows)
    in_channels = 32
    unit_nums = 4       # -> inter_channels = 8

    x = jax.random.normal(k_x, (N, in_channels), jnp.float32)
    params = init_params(k_p, in_channels, unit_nums)

    fwd = jax.jit(relation_between_multi)
    z = fwd(x, params)
    z = jax.block_until_ready(z)

    z_ref = reference(x, params)
    assert z.shape == z_ref.shape == (N, in_channels // unit_nums)
    # bf16 MXU inputs (f, g_x) with f32 accumulation -> loosened tolerance.
    assert jnp.allclose(z, z_ref, rtol=5e-2, atol=2e-6), "mismatch vs reference"

    print("KERNEL_OK")
</pallas_src>

<mosaic_0001>
module attributes {stable_mosaic.version = 11 : i64} {
  func.func @_proj_kernel(%arg0: i32, %arg1: memref<128x32xf32, #tpu.memory_space<vmem>>, %arg2: memref<32x129xf32, #tpu.memory_space<vmem>>, %arg3: memref<1x32xf32, #tpu.memory_space<vmem>>, %arg4: memref<1x130xf32, #tpu.memory_space<vmem>>, %arg5: memref<128x128xbf16, #tpu.memory_space<vmem>>, %arg6: memref<128x1xf32, #tpu.memory_space<vmem>>, %arg7: memref<1x128xf32, #tpu.memory_space<vmem>>) attributes {dimension_semantics = [#tpu.dimension_semantics<parallel>], iteration_bounds = array<i64: 1>, scalar_prefetch = 0 : i64, scratch_operands = 0 : i64, tpu.core_type = #tpu.core_type<tc>, window_params = [{transform_indices = @transform_0, window_bounds = array<i64: 128, 32>}, {pipeline_mode = #tpu.pipeline_mode<synchronous>, transform_indices = @transform_1, window_bounds = array<i64: 32, 129>}, {pipeline_mode = #tpu.pipeline_mode<synchronous>, transform_indices = @transform_2, window_bounds = array<i64: 1, 32>}, {pipeline_mode = #tpu.pipeline_mode<synchronous>, transform_indices = @transform_3, window_bounds = array<i64: 1, 130>}, {transform_indices = @transform_4, window_bounds = array<i64: 128, 128>}, {transform_indices = @transform_5, window_bounds = array<i64: 128, 1>}, {transform_indices = @transform_6, window_bounds = array<i64: 1, 128>}]} {
    %c0 = arith.constant 0 : index
    %c0_0 = arith.constant 0 : index
    %0 = vector.load %arg1[%c0, %c0_0] : memref<128x32xf32, #tpu.memory_space<vmem>>, vector<128x32xf32>
    %c0_1 = arith.constant 0 : index
    %c0_2 = arith.constant 0 : index
    %1 = vector.load %arg4[%c0_1, %c0_2] : memref<1x130xf32, #tpu.memory_space<vmem>>, vector<1x130xf32>
    %c0_3 = arith.constant 0 : index
    %c0_4 = arith.constant 0 : index
    %2 = vector.load %arg2[%c0_3, %c0_4] : memref<32x129xf32, #tpu.memory_space<vmem>>, vector<32x129xf32>
    %cst = arith.constant dense<0.000000e+00> : vector<128x129xf32>
    %3 = tpu.matmul %0, %2, %cst {dimension_numbers = #tpu.dot_dimension_numbers<[1], [0], [0], [1], [0, 0, 1, 1], [], []>} : vector<128x32xf32>, vector<32x129xf32>, vector<128x129xf32> -> vector<128x129xf32>
    %4 = vector.extract_strided_slice %1 {offsets = [0, 0], sizes = [1, 129], strides = [1, 1]} : vector<1x130xf32> to vector<1x129xf32>
    %5 = vector.broadcast %4 : vector<1x129xf32> to vector<128x129xf32>
    %6 = arith.addf %3, %5 : vector<128x129xf32>
    %c128_i32 = arith.constant 128 : i32
    %7 = arith.muli %arg0, %c128_i32 : i32
    %8 = tpu.iota {dimensions = array<i32: 0>} : vector<128x128xi32>
    %9 = vector.broadcast %7 : i32 to vector<128x128xi32>
    %10 = arith.addi %9, %8 : vector<128x128xi32>
    %c8_i32 = arith.constant 8 : i32
    %11 = vector.broadcast %c8_i32 : i32 to vector<128x128xi32>
    %12 = arith.cmpi slt, %10, %11 : vector<128x128xi32>
    %13 = vector.extract_strided_slice %6 {offsets = [0, 0], sizes = [128, 128], strides = [1, 1]} : vector<128x129xf32> to vector<128x128xf32>
    %cst_5 = arith.constant 0.000000e+00 : f32
    %14 = vector.broadcast %cst_5 : f32 to vector<128x128xf32>
    %15 = arith.select %12, %13, %14 : vector<128x128xi1>, vector<128x128xf32>
    %16 = arith.truncf %15 : vector<128x128xf32> to vector<128x128xbf16>
    %c0_6 = arith.constant 0 : index
    %c0_7 = arith.constant 0 : index
    %17 = vector.load %arg5[%c0_6, %c0_7] : memref<128x128xbf16, #tpu.memory_space<vmem>>, vector<128x128xbf16>
    tpu.vector_store %arg5[%c0_6, %c0_7], %16 {strides = array<i32>} : memref<128x128xbf16, #tpu.memory_space<vmem>>, vector<128x128xbf16>,
    %18 = vector.extract_strided_slice %6 {offsets = [0, 128], sizes = [128, 1], strides = [1, 1]} : vector<128x129xf32> to vector<128x1xf32>
    %c0_8 = arith.constant 0 : index
    %c0_9 = arith.constant 0 : index
    %19 = vector.load %arg6[%c0_8, %c0_9] : memref<128x1xf32, #tpu.memory_space<vmem>>, vector<128x1xf32>
    tpu.vector_store %arg6[%c0_8, %c0_9], %18 {strides = array<i32>} : memref<128x1xf32, #tpu.memory_space<vmem>>, vector<128x1xf32>,
    %c0_10 = arith.constant 0 : index
    %c0_11 = arith.constant 0 : index
    %20 = vector.load %arg3[%c0_10, %c0_11] : memref<1x32xf32, #tpu.memory_space<vmem>>, vector<1x32xf32>
    %cst_12 = arith.constant dense<0.000000e+00> : vector<1x128xf32>
    %21 = tpu.matmul %20, %0, %cst_12 {dimension_numbers = #tpu.dot_dimension_numbers<[1], [1], [0], [0], [0, 0, 1, 0], [], []>} : vector<1x32xf32>, vector<128x32xf32>, vector<1x128xf32> -> vector<1x128xf32>
    %22 = vector.extract_strided_slice %1 {offsets = [0, 129], sizes = [1, 1], strides = [1, 1]} : vector<1x130xf32> to vector<1x1xf32>
    %23 = vector.broadcast %22 : vector<1x1xf32> to vector<1x128xf32>
    %24 = arith.addf %21, %23 : vector<1x128xf32>
    %c0_13 = arith.constant 0 : index
    %c0_14 = arith.constant 0 : index
    %25 = vector.load %arg7[%c0_13, %c0_14] : memref<1x128xf32, #tpu.memory_space<vmem>>, vector<1x128xf32>
    tpu.vector_store %arg7[%c0_13, %c0_14], %24 {strides = array<i32>} : memref<1x128xf32, #tpu.memory_space<vmem>>, vector<1x128xf32>,
    return
  }
  func.func @transform_0(%arg0: i32) -> (i32, i32) {
    %c0_i32 = arith.constant 0 : i32
    %c0_i32_0 = arith.constant 0 : i32
    return %arg0, %c0_i32 : i32, i32
  }
  func.func @transform_1(%arg0: i32) -> (i32, i32) {
    %c0_i32 = arith.constant 0 : i32
    %c0_i32_0 = arith.constant 0 : i32
    %c0_i32_1 = arith.constant 0 : i32
    return %c0_i32, %c0_i32_0 : i32, i32
  }
  func.func @transform_2(%arg0: i32) -> (i32, i32) {
    %c0_i32 = arith.constant 0 : i32
    %c0_i32_0 = arith.constant 0 : i32
    %c0_i32_1 = arith.constant 0 : i32
    return %c0_i32, %c0_i32_0 : i32, i32
  }
  func.func @transform_3(%arg0: i32) -> (i32, i32) {
    %c0_i32 = arith.constant 0 : i32
    %c0_i32_0 = arith.constant 0 : i32
    %c0_i32_1 = arith.constant 0 : i32
    return %c0_i32, %c0_i32_0 : i32, i32
  }
  func.func @transform_4(%arg0: i32) -> (i32, i32) {
    %c0_i32 = arith.constant 0 : i32
    %c0_i32_0 = arith.constant 0 : i32
    return %arg0, %c0_i32 : i32, i32
  }
  func.func @transform_5(%arg0: i32) -> (i32, i32) {
    %c0_i32 = arith.constant 0 : i32
    %c0_i32_0 = arith.constant 0 : i32
    return %arg0, %c0_i32 : i32, i32
  }
  func.func @transform_6(%arg0: i32) -> (i32, i32) {
    %c0_i32 = arith.constant 0 : i32
    %c0_i32_0 = arith.constant 0 : i32
    return %c0_i32, %arg0 : i32, i32
  }
}

module attributes {stable_mosaic.version = 11 : i64} {
  func.func @_relation_kernel(%arg0: i32, %arg1: i32, %arg2: memref<128x128xbf16, #tpu.memory_space<vmem>>, %arg3: memref<128x1xf32, #tpu.memory_space<vmem>>, %arg4: memref<1x128xf32, #tpu.memory_space<vmem>>, %arg5: memref<128x128xf32, #tpu.memory_space<vmem>>, %arg6: memref<128x128xf32, #tpu.memory_space<vmem>>) attributes {dimension_semantics = [#tpu.dimension_semantics<parallel>, #tpu.dimension_semantics<arbitrary>], iteration_bounds = array<i64: 1, 1>, scalar_prefetch = 0 : i64, scratch_operands = 1 : i64, tpu.core_type = #tpu.core_type<tc>, window_params = [{transform_indices = @transform_0, window_bounds = array<i64: 128, 128>}, {transform_indices = @transform_1, window_bounds = array<i64: 128, 1>}, {transform_indices = @transform_2, window_bounds = array<i64: 1, 128>}, {transform_indices = @transform_3, window_bounds = array<i64: 128, 128>}]} {
    %c0_i32 = arith.constant 0 : i32
    %0 = arith.cmpi eq, %arg1, %c0_i32 : i32
    %1 = arith.extui %0 : i1 to i32
    %c0_i32_0 = arith.constant 0 : i32
    %2 = arith.cmpi ne, %1, %c0_i32_0 : i32
    scf.if %2 {
      %cst_13 = arith.constant 0.000000e+00 : f32
      %19 = vector.broadcast %cst_13 : f32 to vector<128x128xf32>
      %c0_14 = arith.constant 0 : index
      %c0_15 = arith.constant 0 : index
      %20 = vector.load %arg6[%c0_14, %c0_15] : memref<128x128xf32, #tpu.memory_space<vmem>>, vector<128x128xf32>
      tpu.vector_store %arg6[%c0_14, %c0_15], %19 {strides = array<i32>} : memref<128x128xf32, #tpu.memory_space<vmem>>, vector<128x128xf32>,
    } else {
    }
    %c0 = arith.constant 0 : index
    %c0_1 = arith.constant 0 : index
    %3 = vector.load %arg3[%c0, %c0_1] : memref<128x1xf32, #tpu.memory_space<vmem>>, vector<128x1xf32>
    %c0_2 = arith.constant 0 : index
    %c0_3 = arith.constant 0 : index
    %4 = vector.load %arg4[%c0_2, %c0_3] : memref<1x128xf32, #tpu.memory_space<vmem>>, vector<1x128xf32>
    %5 = vector.broadcast %3 : vector<128x1xf32> to vector<128x128xf32>
    %6 = vector.broadcast %4 : vector<1x128xf32> to vector<128x128xf32>
    %7 = arith.addf %5, %6 : vector<128x128xf32>
    %cst = arith.constant 0.000000e+00 : f32
    %8 = vector.broadcast %cst : f32 to vector<128x128xf32>
    %9 = arith.maximumf %7, %8 : vector<128x128xf32>
    %c0_4 = arith.constant 0 : index
    %c0_5 = arith.constant 0 : index
    %10 = vector.load %arg6[%c0_4, %c0_5] : memref<128x128xf32, #tpu.memory_space<vmem>>, vector<128x128xf32>
    %11 = arith.truncf %9 : vector<128x128xf32> to vector<128x128xbf16>
    %c0_6 = arith.constant 0 : index
    %c0_7 = arith.constant 0 : index
    %12 = vector.load %arg2[%c0_6, %c0_7] : memref<128x128xbf16, #tpu.memory_space<vmem>>, vector<128x128xbf16>
    %cst_8 = arith.constant dense<0.000000e+00> : vector<128x128xf32>
    %13 = tpu.matmul %11, %12, %cst_8 {dimension_numbers = #tpu.dot_dimension_numbers<[1], [0], [0], [1], [0, 0, 1, 1], [], []>} : vector<128x128xbf16>, vector<128x128xbf16>, vector<128x128xf32> -> vector<128x128xf32>
    %14 = arith.addf %10, %13 : vector<128x128xf32>
    %c0_9 = arith.constant 0 : index
    %c0_10 = arith.constant 0 : index
    %15 = vector.load %arg6[%c0_9, %c0_10] : memref<128x128xf32, #tpu.memory_space<vmem>>, vector<128x128xf32>
    tpu.vector_store %arg6[%c0_9, %c0_10], %14 {strides = array<i32>} : memref<128x128xf32, #tpu.memory_space<vmem>>, vector<128x128xf32>,
    %c0_i32_11 = arith.constant 0 : i32
    %16 = arith.cmpi eq, %arg1, %c0_i32_11 : i32
    %17 = arith.extui %16 : i1 to i32
    %c0_i32_12 = arith.constant 0 : i32
    %18 = arith.cmpi ne, %17, %c0_i32_12 : i32
    scf.if %18 {
      %c0_13 = arith.constant 0 : index
      %c0_14 = arith.constant 0 : index
      %19 = vector.load %arg6[%c0_13, %c0_14] : memref<128x128xf32, #tpu.memory_space<vmem>>, vector<128x128xf32>
      %c0_15 = arith.constant 0 : index
      %c0_16 = arith.constant 0 : index
      %20 = vector.load %arg5[%c0_15, %c0_16] : memref<128x128xf32, #tpu.memory_space<vmem>>, vector<128x128xf32>
      tpu.vector_store %arg5[%c0_15, %c0_16], %19 {strides = array<i32>} : memref<128x128xf32, #tpu.memory_space<vmem>>, vector<128x128xf32>,
    } else {
    }
    return
  }
  func.func @transform_0(%arg0: i32, %arg1: i32) -> (i32, i32) {
    %c0_i32 = arith.constant 0 : i32
    %c0_i32_0 = arith.constant 0 : i32
    return %arg1, %c0_i32 : i32, i32
  }
  func.func @transform_1(%arg0: i32, %arg1: i32) -> (i32, i32) {
    %c0_i32 = arith.constant 0 : i32
    %c0_i32_0 = arith.constant 0 : i32
    return %arg0, %c0_i32 : i32, i32
  }
  func.func @transform_2(%arg0: i32, %arg1: i32) -> (i32, i32) {
    %c0_i32 = arith.constant 0 : i32
    %c0_i32_0 = arith.constant 0 : i32
    return %c0_i32, %arg1 : i32, i32
  }
  func.func @transform_3(%arg0: i32, %arg1: i32) -> (i32, i32) {
    %c0_i32 = arith.constant 0 : i32
    %c0_i32_0 = arith.constant 0 : i32
    return %arg0, %c0_i32 : i32, i32
  }
}

</mosaic_0001>

<bundles_post_ra>
// kernel: relation_between_multi.2
= control target key start
LH: loop header
LB: loop body
LE: loop exit
PB: predicated region body
PF: predicated region fallthrough
CT: control target
= control target key end

     0   :  { %v677_v3 = vmov 0.0|0.0   ;;  %vm56_vm0 = vcmask 261120   ;;  %v678_v6 = vmov 0.0   ;;  %vm679_vm1 = vmmov 0   ;;  %s1006_s1 = inlined_call_operand.vmem [shape: f32[32,129], index: 1, kind: input, shape index: {}]   ;;  %s1007_s0 = inlined_call_operand.vmem [shape: f32[128,32], index: 0, kind: input, shape index: {}]   ;;  %s1008_s4 = inlined_call_operand.vmem [shape: bf16[128,128], index: 4, kind: output, shape index: {0}]   ;;  %s1009_s3 = inlined_call_operand.vmem [shape: f32[1,130], index: 3, kind: input, shape index: {}]   ;;  %s1010_s2 = inlined_call_operand.vmem [shape: f32[1,32], index: 2, kind: input, shape index: {}]   ;;  %s1011_s5 = inlined_call_operand.vmem [shape: f32[128,1], index: 5, kind: output, shape index: {1}]   ;;  %s1012_s6 = inlined_call_operand.vmem [shape: f32[1,128], index: 6, kind: output, shape index: {2}]  }
   0x1   :  { %v38_v0 = vld [vmem:[%s1006_s1 + $0x8] sm:$0xff]  ;;  %v40_v1 = vld [vmem:[%s1006_s1 + $0x18] sm:$0xff]  ;;  %v37_v2 = vld [vmem:[%s1006_s1] sm:$0xff]  ;;  %v543_v4 = vcombine.low %v677_v3, %v677_v3  ;;  %v544_v5 = vcombine.high %v677_v3, %v677_v3  ;;  %640 = vmatprep.subr.bf16.mxu1 %v677_v3  ;;  %169 = vmatprep.mubr.f32.mxu0 %v678_v6  ;;  %v680_v11 = vmov 1   ;;  %v46_v44 = vlaneseq }
   0x2   :  { %v632_v7 = vpack.c.bf16 %v40_v1, %v38_v0  ;;  %v39_v8 = vld [vmem:[%s1006_s1 + $0x10] sm:$0xff]  ;;  %v42_v9 = vld [vmem:[%s1006_s1 + $0x28] sm:$0xff]  ;;  %v44_v10 = vld [vmem:[%s1006_s1 + $0x38] sm:$0xff]  ;;  %629 = vmatprep.mubr.msk.f32.mxu1 %vm679_vm1, %v678_v6  ;;  %676 = vset.pattern.permute.xlu0 %v680_v11  ;;  %vm413_vm3 = vcmask 7168  }
   0x3   :  { %v634_v12 = vpack.c.bf16 %v39_v8, %v37_v2  ;;  %v636_v13 = vpack.c.bf16 %v44_v10, %v42_v9  ;;  %v41_v14 = vld [vmem:[%s1006_s1 + $0x20] sm:$0xff]  ;;  %v43_v15 = vld [vmem:[%s1006_s1 + $0x30] sm:$0xff]  ;;  %399 = vst [vmem:[%s1008_s4 + $0x8] sm:$0xf] %v543_v4  ;;  %400 = vst [vmem:[%s1008_s4 + $0xc] sm:$0xf] %v544_v5 }
   0x4   :  { %v20_v16 = vld [vmem:[%s1007_s0] sm:$0xff]  ;;  %401 = vst [vmem:[%s1008_s4 + $0x10] sm:$0xf] %v543_v4  ;;  %402 = vst [vmem:[%s1008_s4 + $0x14] sm:$0xf] %v544_v5  ;;  %633 = vmatprep.subr.bf16.mxu0 %v632_v7  ;;  %v21_v17 = vld [vmem:[%s1007_s0 + $0x8] sm:$0xff]  ;;  %v638_v19 = vpack.c.bf16 %v43_v15, %v41_v14 }
   0x5   :  { %403 = vst [vmem:[%s1008_s4 + $0x18] sm:$0xf] %v543_v4  ;;  %404 = vst [vmem:[%s1008_s4 + $0x1c] sm:$0xf] %v544_v5  ;;  %635 = vmatpush1.bf16.msra.mxu0 %v634_v12  ;;  %v641_v20 = vpack.c.bf16 %v21_v17, %v20_v16  ;;  %v22_v21 = vld [vmem:[%s1007_s0 + $0x10] sm:$0xff]  ;;  %v23_v22 = vld [vmem:[%s1007_s0 + $0x18] sm:$0xff] }
   0x6   :  { %405 = vst [vmem:[%s1008_s4 + $0x20] sm:$0xf] %v543_v4  ;;  %406 = vst [vmem:[%s1008_s4 + $0x24] sm:$0xf] %v544_v5  ;;  %637 = vmatprep.subr.bf16.mxu0 %v636_v13  ;;  %v813_v23 = vld [vmem:[%s1009_s3] sm:$0x3]  ;;  %v645_v24 = vpack.c.bf16 %v23_v22, %v22_v21 }
   0x7   :  { %407 = vst [vmem:[%s1008_s4 + $0x28] sm:$0xf] %v543_v4  ;;  %408 = vst [vmem:[%s1008_s4 + $0x2c] sm:$0xf] %v544_v5  ;;  %432 = vperm.xlu0 %676, %v813_v23   ;;  %v24_v25 = vld [vmem:[%s1007_s0 + $0x20] sm:$0xff]  ;;  %v25_v26 = vld [vmem:[%s1007_s0 + $0x28] sm:$0xff] }
   0x8   :  { %409 = vst [vmem:[%s1008_s4 + $0x30] sm:$0xf] %v543_v4  ;;  %410 = vst [vmem:[%s1008_s4 + $0x34] sm:$0xf] %v544_v5  ;;  %v649_v27 = vpack.c.bf16 %v25_v26, %v24_v25  ;;  %v26_v28 = vld [vmem:[%s1007_s0 + $0x30] sm:$0xff]  ;;  %v27_v29 = vld [vmem:[%s1007_s0 + $0x38] sm:$0xff] }
   0x9   :  { %411 = vst [vmem:[%s1008_s4 + $0x38] sm:$0xf] %v543_v4  ;;  %412 = vst [vmem:[%s1008_s4 + $0x3c] sm:$0xf] %v544_v5  ;;  %639 = vmatpush1.bf16.msra.mxu0 %v638_v19  ;;  %v653_v30 = vpack.c.bf16 %v27_v29, %v26_v28  ;;  %v28_v31 = vld [vmem:[%s1007_s0 + $0x40] sm:$0xff]  ;;  %v29_v32 = vld [vmem:[%s1007_s0 + $0x48] sm:$0xff] }
   0xa   :  { %vm797_vm2 = vmpackc.low %vm56_vm0, %vm56_vm0  ;;  %v657_v33 = vpack.c.bf16 %v29_v32, %v28_v31  ;;  %v30_v34 = vld [vmem:[%s1007_s0 + $0x50] sm:$0xff]  ;;  %v31_v35 = vld [vmem:[%s1007_s0 + $0x58] sm:$0xff]  ;;  %v907_v45 = vshrl.u32 %v46_v44, 7 }
   0xb   :  { %643 = vmatpush3.bf16.xpose.msk.msra.mxu1 %vm797_vm2, %v641_v20  ;;  %v661_v36 = vpack.c.bf16 %v31_v35, %v30_v34  ;;  %v32_v37 = vld [vmem:[%s1007_s0 + $0x60] sm:$0xff]  ;;  %v33_v38 = vld [vmem:[%s1007_s0 + $0x68] sm:$0xff]  ;;  %v34_v40 = vld [vmem:[%s1007_s0 + $0x70] sm:$0xff] }
   0xc   :  { %644 = vmatprep.subr.bf16.mxu1 %v677_v3  ;;  %525 = vmatmul.mubr.msk.f32.vlgmr.msra.gmra.mrb[0].mxu0 %vm56_vm0, %v20_v16  ;;  %v665_v39 = vpack.c.bf16 %v33_v38, %v32_v37  ;;  %v35_v41 = vld [vmem:[%s1007_s0 + $0x78] sm:$0xff]  ;;  %v430_v43 = vld [vmem:[%s1010_s2] sm:$0x1]  ;;  %v48_v46 = vsub.s32 0, %v907_v45  ;;  %v52_v47 = vsub.s32 1, %v907_v45 }
   0xd   :  { %175 = vmatprep.mubr.f32.mxu0 %v678_v6  ;;  %v669_v42 = vpack.c.bf16 %v35_v41, %v34_v40 }
   0xe   :  { %v49_v48 = vrot.slane %v813_v23, %v48_v46  ;;  %v915_v49 = vrot.slane %v813_v23, %v52_v47 }
  0x10   :  { %526 = vmatmul.mubr.msk.f32.gmra.mrb[2].mxu0 %vm56_vm0, %v21_v17 }
  0x11   :  { %181 = vmatprep.mubr.f32.mxu0 %v678_v6 }
  0x13   :  { %647 = vmatpush3.bf16.xpose.msk.msra.mxu1 %vm797_vm2, %v645_v24 }
  0x14   :  { %648 = vmatprep.subr.bf16.mxu1 %v677_v3  ;;  %527 = vmatmul.mubr.msk.f32.gmra.mrb[4].mxu0 %vm56_vm0, %v22_v21 }
  0x15   :  { %187 = vmatprep.mubr.f32.mxu0 %v678_v6 }
  0x18   :  { %528 = vmatmul.mubr.msk.f32.gmra.mrb[6].mxu0 %vm56_vm0, %v23_v22 }
  0x19   :  { %193 = vmatprep.mubr.f32.mxu0 %v678_v6 }
  0x1b   :  { %651 = vmatpush3.bf16.xpose.msk.msra.mxu1 %vm797_vm2, %v649_v27 }
  0x1c   :  { %652 = vmatprep.subr.bf16.mxu1 %v677_v3  ;;  %529 = vmatmul.mubr.msk.f32.gmra.mrb[8].mxu0 %vm56_vm0, %v24_v25 }
  0x1d   :  { %199 = vmatprep.mubr.f32.mxu0 %v678_v6 }
  0x20   :  { %530 = vmatmul.mubr.msk.f32.gmra.mrb[10].mxu0 %vm56_vm0, %v25_v26 }
  0x21   :  { %205 = vmatprep.mubr.f32.mxu0 %v678_v6 }
  0x23   :  { %655 = vmatpush3.bf16.xpose.msk.msra.mxu1 %vm797_vm2, %v653_v30 }
  0x24   :  { %656 = vmatprep.subr.bf16.mxu1 %v677_v3  ;;  %531 = vmatmul.mubr.msk.f32.gmra.mrb[12].mxu0 %vm56_vm0, %v26_v28 }
  0x25   :  { %211 = vmatprep.mubr.f32.mxu0 %v678_v6 }
  0x28   :  { %532 = vmatmul.mubr.msk.f32.gmra.mrb[14].mxu0 %vm56_vm0, %v27_v29 }
  0x29   :  { %217 = vmatprep.mubr.f32.mxu0 %v678_v6 }
  0x2b   :  { %659 = vmatpush3.bf16.xpose.msk.msra.mxu1 %vm797_vm2, %v657_v33 }
  0x2c   :  { %660 = vmatprep.subr.bf16.mxu1 %v677_v3  ;;  %533 = vmatmul.mubr.msk.f32.gmra.mrb[16].mxu0 %vm56_vm0, %v28_v31 }
  0x2d   :  { %223 = vmatprep.mubr.f32.mxu0 %v678_v6 }
  0x30   :  { %534 = vmatmul.mubr.msk.f32.gmra.mrb[18].mxu0 %vm56_vm0, %v29_v32 }
  0x31   :  { %229 = vmatprep.mubr.f32.mxu0 %v678_v6 }
  0x33   :  { %663 = vmatpush3.bf16.xpose.msk.msra.mxu1 %vm797_vm2, %v661_v36 }
  0x34   :  { %664 = vmatprep.subr.bf16.mxu1 %v677_v3  ;;  %535 = vmatmul.mubr.msk.f32.gmra.mrb[20].mxu0 %vm56_vm0, %v30_v34 }
  0x35   :  { %235 = vmatprep.mubr.f32.mxu0 %v678_v6 }
  0x38   :  { %536 = vmatmul.mubr.msk.f32.gmra.mrb[22].mxu0 %vm56_vm0, %v31_v35 }
  0x39   :  { %241 = vmatprep.mubr.f32.mxu0 %v678_v6 }
  0x3b   :  { %667 = vmatpush3.bf16.xpose.msk.msra.mxu1 %vm797_vm2, %v665_v39 }
  0x3c   :  { %668 = vmatprep.subr.bf16.mxu1 %v677_v3  ;;  %537 = vmatmul.mubr.msk.f32.gmra.mrb[24].mxu0 %vm56_vm0, %v32_v37 }
  0x3d   :  { %247 = vmatprep.mubr.f32.mxu0 %v678_v6 }
  0x40   :  { %538 = vmatmul.mubr.msk.f32.gmra.mrb[26].mxu0 %vm56_vm0, %v33_v38 }
  0x41   :  { %253 = vmatprep.mubr.f32.mxu0 %v678_v6 }
  0x43   :  { %671 = vmatpush3.bf16.xpose.msk.msra.mxu1 %vm797_vm2, %v669_v42 }
  0x44   :  { %539 = vmatmul.mubr.msk.f32.gmra.mrb[28].mxu0 %vm56_vm0, %v34_v40 }
  0x45   :  { %259 = vmatprep.mubr.f32.mxu0 %v678_v6 }
  0x48   :  { %540 = vmatmul.mubr.msk.f32.gmra.mrb[30].mxu0 %vm56_vm0, %v35_v41 }
  0x4a   :  { %630 = vmatmul.mubr.msk.f32.vlgmr.msra.gmra.mrb[0].mxu1 %vm56_vm0, %v430_v43 }
  0x86   :  { %v433_v28 = vpop.permute.xlu0 %432 }
  0x87   :  { %v438_v31 = vrot.slane %v433_v28, %v52_v47 }
  0xdf   :  { %v171_v50 = vpop.f32.mrb[0].mxu0 }
  0xe0   :  { %v172_v51 = vadd.f32 %v171_v50, %v49_v48  ;;  %v173_v52 = vpop.f32.mrb[1].mxu0 }
  0xe1   :  { %v174_v53 = vadd.f32 %v173_v52, %v915_v49 }
  0xe2   :  { %v578_v54 = vpack.c.bf16 %v678_v6, %v172_v51 }
  0xe3   :  { %414 = vst.msk [vmem:[%s1011_s5] sm:$0xff] %vm413_vm3, %v174_v53  ;;  %v177_v55 = vpop.f32.mrb[2].mxu0 }
  0xe4   :  { %579 = vst [vmem:[%s1008_s4] sm:$0xff] %v578_v54   ;;  %v179_v56 = vpop.f32.mrb[3].mxu0 }
  0xe5   :  { %v180_v57 = vadd.f32 %v179_v56, %v915_v49 }
  0xe7   :  { %415 = vst.msk [vmem:[%s1011_s5 + $0x8] sm:$0xff] %vm413_vm3, %v180_v57  ;;  %v183_v58 = vpop.f32.mrb[4].mxu0 }
  0xe8   :  { %v185_v59 = vpop.f32.mrb[5].mxu0 }
  0xe9   :  { %v186_v60 = vadd.f32 %v185_v59, %v915_v49 }
  0xeb   :  { %416 = vst.msk [vmem:[%s1011_s5 + $0x10] sm:$0xff] %vm413_vm3, %v186_v60  ;;  %v189_v61 = vpop.f32.mrb[6].mxu0 }
  0xec   :  { %v191_v62 = vpop.f32.mrb[7].mxu0 }
  0xed   :  { %v192_v63 = vadd.f32 %v191_v62, %v915_v49 }
  0xef   :  { %417 = vst.msk [vmem:[%s1011_s5 + $0x18] sm:$0xff] %vm413_vm3, %v192_v63  ;;  %v195_v0 = vpop.f32.mrb[8].mxu0 }
  0xf0   :  { %v197_v1 = vpop.f32.mrb[9].mxu0 }
  0xf1   :  { %v198_v2 = vadd.f32 %v197_v1, %v915_v49 }
  0xf3   :  { %418 = vst.msk [vmem:[%s1011_s5 + $0x20] sm:$0xff] %vm413_vm3, %v198_v2  ;;  %v201_v3 = vpop.f32.mrb[10].mxu0 }
  0xf4   :  { %v203_v4 = vpop.f32.mrb[11].mxu0 }
  0xf5   :  { %v204_v5 = vadd.f32 %v203_v4, %v915_v49 }
  0xf7   :  { %419 = vst.msk [vmem:[%s1011_s5 + $0x28] sm:$0xff] %vm413_vm3, %v204_v5  ;;  %v207_v6 = vpop.f32.mrb[12].mxu0 }
  0xf8   :  { %v209_v7 = vpop.f32.mrb[13].mxu0 }
  0xf9   :  { %v210_v8 = vadd.f32 %v209_v7, %v915_v49 }
  0xfb   :  { %420 = vst.msk [vmem:[%s1011_s5 + $0x30] sm:$0xff] %vm413_vm3, %v210_v8  ;;  %v213_v9 = vpop.f32.mrb[14].mxu0 }
  0xfc   :  { %v215_v10 = vpop.f32.mrb[15].mxu0 }
  0xfd   :  { %v216_v11 = vadd.f32 %v215_v10, %v915_v49 }
  0xff   :  { %421 = vst.msk [vmem:[%s1011_s5 + $0x38] sm:$0xff] %vm413_vm3, %v216_v11  ;;  %v219_v12 = vpop.f32.mrb[16].mxu0 }
 0x100   :  { %v221_v13 = vpop.f32.mrb[17].mxu0 }
 0x101   :  { %v222_v14 = vadd.f32 %v221_v13, %v915_v49 }
 0x103   :  { %422 = vst.msk [vmem:[%s1011_s5 + $0x40] sm:$0xff] %vm413_vm3, %v222_v14  ;;  %v225_v15 = vpop.f32.mrb[18].mxu0 }
 0x104   :  { %v227_v16 = vpop.f32.mrb[19].mxu0 }
 0x105   :  { %v228_v17 = vadd.f32 %v227_v16, %v915_v49 }
 0x107   :  { %423 = vst.msk [vmem:[%s1011_s5 + $0x48] sm:$0xff] %vm413_vm3, %v228_v17  ;;  %v231_v18 = vpop.f32.mrb[20].mxu0 }
 0x108   :  { %v233_v19 = vpop.f32.mrb[21].mxu0 }
 0x109   :  { %v234_v20 = vadd.f32 %v233_v19, %v915_v49 }
 0x10b   :  { %424 = vst.msk [vmem:[%s1011_s5 + $0x50] sm:$0xff] %vm413_vm3, %v234_v20  ;;  %v237_v21 = vpop.f32.mrb[22].mxu0 }
 0x10c   :  { %v239_v22 = vpop.f32.mrb[23].mxu0 }
 0x10d   :  { %v240_v23 = vadd.f32 %v239_v22, %v915_v49 }
 0x10f   :  { %425 = vst.msk [vmem:[%s1011_s5 + $0x58] sm:$0xff] %vm413_vm3, %v240_v23  ;;  %v243_v24 = vpop.f32.mrb[24].mxu0 }
 0x110   :  { %v245_v25 = vpop.f32.mrb[25].mxu0 }
 0x111   :  { %v246_v26 = vadd.f32 %v245_v25, %v915_v49 }
 0x113   :  { %426 = vst.msk [vmem:[%s1011_s5 + $0x60] sm:$0xff] %vm413_vm3, %v246_v26  ;;  %v249_v27 = vpop.f32.mrb[26].mxu0 }
 0x114   :  { %v251_v29 = vpop.f32.mrb[27].mxu0 }
 0x115   :  { %v252_v30 = vadd.f32 %v251_v29, %v915_v49 }
 0x117   :  { %427 = vst.msk [vmem:[%s1011_s5 + $0x68] sm:$0xff] %vm413_vm3, %v252_v30  ;;  %v255_v32 = vpop.f32.mrb[28].mxu0 }
 0x118   :  { %v257_v33 = vpop.f32.mrb[29].mxu0 }
 0x119   :  { %v258_v34 = vadd.f32 %v257_v33, %v915_v49 }
 0x11b   :  { %428 = vst.msk [vmem:[%s1011_s5 + $0x70] sm:$0xff] %vm413_vm3, %v258_v34  ;;  %v261_v38 = vpop.f32.mrb[30].mxu0 }
 0x11c   :  { %v263_v39 = vpop.f32.mrb[31].mxu0 }
 0x11d   :  { %v508_v35 = vpop.f32.mrb[0].mxu1  ;;  %v264_v40 = vadd.f32 %v263_v39, %v915_v49 }
 0x11e   :  { %v509_v36 = vadd.f32 %v508_v35, %v438_v31  ;;  %v631_v37 = vpop.f32.mrb[1].mxu1 }
 0x11f   :  { %429 = vst.msk [vmem:[%s1011_s5 + $0x78] sm:$0xff] %vm413_vm3, %v264_v40 }
 0x120   :  { %512 = vst [vmem:[%s1012_s6] sm:$0x1] %v509_v36 }

// kernel: relation_between_multi.3
= control target key start
LH: loop header
LB: loop body
LE: loop exit
PB: predicated region body
PF: predicated region fallthrough
CT: control target
= control target key end

     0   :  { %v510_v0 = vmov 0   ;;  %s654_s1 = inlined_call_operand.vmem [shape: f32[128,1], index: 1, kind: input, shape index: {}]   ;;  %s655_s0 = inlined_call_operand.vmem [shape: bf16[128,128], index: 0, kind: input, shape index: {}]   ;;  %s656_s2 = inlined_call_operand.vmem [shape: f32[1,128], index: 2, kind: input, shape index: {}]   ;;  %s657_s3 = inlined_call_operand.vmem [shape: f32[128,128], index: 3, kind: output, shape index: {}]  }
   0x1   :  { %501 = vset.pattern.permute.xlu1 %v510_v0  ;;  %500 = vset.pattern.permute.xlu0 %v510_v0  ;;  %v43_v1 = vld [vmem:[%s654_s1 + $0x40] sm:$0xff]  ;;  %v44_v3 = vld [vmem:[%s654_s1 + $0x48] sm:$0xff]  ;;  %v38_v5 = vld [vmem:[%s654_s1 + $0x18] sm:$0xff] }
   0x2   :  { %v35_v2 = vld [vmem:[%s654_s1] sm:$0xff]  ;;  %94 = vperm.xlu1 %501, %v43_v1   ;;  %v36_v4 = vld [vmem:[%s654_s1 + $0x8] sm:$0xff]  ;;  %v37_v6 = vld [vmem:[%s654_s1 + $0x10] sm:$0xff] }
   0x3   :  { %54 = vperm.xlu0 %500, %v35_v2   ;;  %v502_v7 = vld [vmem:[%s655_s0] sm:$0xff]   ;;  %v503_v8 = vld [vmem:[%s655_s0 + $0x8] sm:$0xff]   ;;  %v46_v9 = vld [vmem:[%s654_s1 + $0x58] sm:$0xff] }
   0x4   :  { %451 = vmatprep.subr.bf16.mxu0 %v502_v7  ;;  %483 = vmatprep.subr.bf16.mxu1 %v502_v7  ;;  %v45_v10 = vld [vmem:[%s654_s1 + $0x50] sm:$0xff]  ;;  %v40_v12 = vld [vmem:[%s654_s1 + $0x28] sm:$0xff]  ;;  %v39_v13 = vld [vmem:[%s654_s1 + $0x20] sm:$0xff] }
   0x5   :  { %452 = vmatpush3.bf16.msra.mxu0 %v502_v7  ;;  %491 = vmatpush3.bf16.msra.mxu1 %v502_v7  ;;  %v504_v11 = vld [vmem:[%s655_s0 + $0x10] sm:$0xff]   ;;  %v505_v14 = vld [vmem:[%s655_s0 + $0x18] sm:$0xff]   ;;  %v48_v15 = vld [vmem:[%s654_s1 + $0x68] sm:$0xff] }
   0x6   :  { %99 = vperm.xlu1 %501, %v44_v3   ;;  %453 = vmatprep.subr.bf16.mxu0 %v503_v8  ;;  %v47_v16 = vld [vmem:[%s654_s1 + $0x60] sm:$0xff]  ;;  %v42_v18 = vld [vmem:[%s654_s1 + $0x38] sm:$0xff]  ;;  %v41_v19 = vld [vmem:[%s654_s1 + $0x30] sm:$0xff] }
   0x7   :  { %59 = vperm.xlu0 %500, %v36_v4   ;;  %484 = vmatprep.subr.bf16.mxu1 %v503_v8  ;;  %v506_v17 = vld [vmem:[%s655_s0 + $0x20] sm:$0xff]   ;;  %v507_v20 = vld [vmem:[%s655_s0 + $0x28] sm:$0xff]   ;;  %v50_v21 = vld [vmem:[%s654_s1 + $0x78] sm:$0xff] }
   0x8   :  { %v49_v22 = vld [vmem:[%s654_s1 + $0x70] sm:$0xff]  ;;  %v509_v24 = vld [vmem:[%s655_s0 + $0x38] sm:$0xff]   ;;  %v426_v25 = vld [vmem:[%s656_s2] ss:$0 sm:$0xff] }
   0x9   :  { %454 = vmatpush3.bf16.msra.mxu0 %v503_v8  ;;  %492 = vmatpush3.bf16.msra.mxu1 %v503_v8  ;;  %v508_v23 = vld [vmem:[%s655_s0 + $0x30] sm:$0xff]  }
   0xa   :  { %69 = vperm.xlu1 %501, %v38_v5   ;;  %455 = vmatprep.subr.bf16.mxu0 %v504_v11 }
   0xb   :  { %64 = vperm.xlu0 %500, %v37_v6   ;;  %485 = vmatprep.subr.bf16.mxu1 %v504_v11 }
   0xd   :  { %456 = vmatpush3.bf16.msra.mxu0 %v504_v11  ;;  %493 = vmatpush3.bf16.msra.mxu1 %v504_v11 }
   0xe   :  { %109 = vperm.xlu1 %501, %v46_v9   ;;  %457 = vmatprep.subr.bf16.mxu0 %v505_v14 }
   0xf   :  { %104 = vperm.xlu0 %500, %v45_v10   ;;  %486 = vmatprep.subr.bf16.mxu1 %v505_v14 }
  0x11   :  { %458 = vmatpush3.bf16.msra.mxu0 %v505_v14  ;;  %494 = vmatpush3.bf16.msra.mxu1 %v505_v14 }
  0x12   :  { %79 = vperm.xlu1 %501, %v40_v12   ;;  %459 = vmatprep.subr.bf16.mxu0 %v506_v17 }
  0x13   :  { %74 = vperm.xlu0 %500, %v39_v13   ;;  %487 = vmatprep.subr.bf16.mxu1 %v506_v17 }
  0x15   :  { %460 = vmatpush3.bf16.msra.mxu0 %v506_v17  ;;  %495 = vmatpush3.bf16.msra.mxu1 %v506_v17 }
  0x16   :  { %119 = vperm.xlu1 %501, %v48_v15   ;;  %461 = vmatprep.subr.bf16.mxu0 %v507_v20 }
  0x17   :  { %114 = vperm.xlu0 %500, %v47_v16   ;;  %488 = vmatprep.subr.bf16.mxu1 %v507_v20 }
  0x19   :  { %462 = vmatpush3.bf16.msra.mxu0 %v507_v20  ;;  %496 = vmatpush3.bf16.msra.mxu1 %v507_v20 }
  0x1a   :  { %89 = vperm.xlu1 %501, %v42_v18   ;;  %463 = vmatprep.subr.bf16.mxu0 %v508_v23 }
  0x1b   :  { %84 = vperm.xlu0 %500, %v41_v19   ;;  %489 = vmatprep.subr.bf16.mxu1 %v508_v23 }
  0x1d   :  { %464 = vmatpush3.bf16.msra.mxu0 %v508_v23  ;;  %497 = vmatpush3.bf16.msra.mxu1 %v508_v23 }
  0x1e   :  { %129 = vperm.xlu1 %501, %v50_v21   ;;  %465 = vmatprep.subr.bf16.mxu0 %v509_v24 }
  0x1f   :  { %124 = vperm.xlu0 %500, %v49_v22   ;;  %490 = vmatprep.subr.bf16.mxu1 %v509_v24 }
  0x21   :  { %466 = vmatpush3.bf16.msra.mxu0 %v509_v24  ;;  %498 = vmatpush3.bf16.msra.mxu1 %v509_v24 }
  0x81   :  { %v95_v26 = vpop.permute.xlu1 %94 }
  0x82   :  { %v55_v27 = vpop.permute.xlu0 %54  ;;  %v146_v28 = vadd.f32 %v426_v25, %v95_v26 }
  0x83   :  { %v138_v29 = vadd.f32 %v426_v25, %v55_v27 }
  0x84   :  { %v162_v34 = vmax.f32 %v146_v28, 0.0 }
  0x85   :  { %v100_v30 = vpop.permute.xlu1 %99  ;;  %v154_v35 = vmax.f32 %v138_v29, 0.0 }
  0x86   :  { %v60_v31 = vpop.permute.xlu0 %59  ;;  %v147_v32 = vadd.f32 %v426_v25, %v100_v30 }
  0x87   :  { %v139_v33 = vadd.f32 %v426_v25, %v60_v31 }
  0x88   :  { %v163_v36 = vmax.f32 %v147_v32, 0.0 }
  0x89   :  { %v155_v37 = vmax.f32 %v139_v33, 0.0  ;;  %v70_v38 = vpop.permute.xlu1 %69 }
  0x8a   :  { %v65_v39 = vpop.permute.xlu0 %64  ;;  %v141_v40 = vadd.f32 %v426_v25, %v70_v38  ;;  %v190_v43 = vpack.c.bf16 %v163_v36, %v162_v34 }
  0x8b   :  { %v140_v41 = vadd.f32 %v426_v25, %v65_v39  ;;  %v186_v42 = vpack.c.bf16 %v155_v37, %v154_v35 }
  0x8c   :  { %v157_v44 = vmax.f32 %v141_v40, 0.0  ;;  %475 = vmatprep.mubr.bf16.mxu1 %v190_v43 }
  0x8d   :  { %v156_v45 = vmax.f32 %v140_v41, 0.0  ;;  %467 = vmatprep.mubr.bf16.mxu0 %v186_v42  ;;  %v110_v46 = vpop.permute.xlu1 %109 }
  0x8e   :  { %v105_v47 = vpop.permute.xlu0 %104  ;;  %v149_v49 = vadd.f32 %v426_v25, %v110_v46 }
  0x8f   :  { %v187_v48 = vpack.c.bf16 %v157_v44, %v156_v45  ;;  %v148_v50 = vadd.f32 %v426_v25, %v105_v47 }
  0x90   :  { %v165_v51 = vmax.f32 %v149_v49, 0.0 }
  0x91   :  { %v164_v52 = vmax.f32 %v148_v50, 0.0  ;;  %468 = vmatmul.mubr.bf16.vlgmr.msra.gmra.mrb[0].mxu0 %v187_v48  ;;  %v80_v53 = vpop.permute.xlu1 %79 }
  0x92   :  { %v75_v54 = vpop.permute.xlu0 %74  ;;  %v143_v56 = vadd.f32 %v426_v25, %v80_v53 }
  0x93   :  { %v191_v55 = vpack.c.bf16 %v165_v51, %v164_v52  ;;  %v142_v57 = vadd.f32 %v426_v25, %v75_v54 }
  0x94   :  { %v159_v58 = vmax.f32 %v143_v56, 0.0 }
  0x95   :  { %v158_v59 = vmax.f32 %v142_v57, 0.0  ;;  %476 = vmatmul.mubr.bf16.vlgmr.msra.gmra.mrb[0].mxu1 %v191_v55  ;;  %v120_v60 = vpop.permute.xlu1 %119 }
  0x96   :  { %v115_v61 = vpop.permute.xlu0 %114  ;;  %v151_v63 = vadd.f32 %v426_v25, %v120_v60 }
  0x97   :  { %v188_v62 = vpack.c.bf16 %v159_v58, %v158_v59  ;;  %v150_v0 = vadd.f32 %v426_v25, %v115_v61 }
  0x98   :  { %v167_v1 = vmax.f32 %v151_v63, 0.0 }
  0x99   :  { %v166_v2 = vmax.f32 %v150_v0, 0.0  ;;  %471 = vmatprep.mubr.bf16.mxu0 %v188_v62  ;;  %v90_v3 = vpop.permute.xlu1 %89 }
  0x9a   :  { %v85_v4 = vpop.permute.xlu0 %84  ;;  %v145_v6 = vadd.f32 %v426_v25, %v90_v3 }
  0x9b   :  { %v192_v5 = vpack.c.bf16 %v167_v1, %v166_v2  ;;  %v144_v7 = vadd.f32 %v426_v25, %v85_v4 }
  0x9c   :  { %v161_v8 = vmax.f32 %v145_v6, 0.0 }
  0x9d   :  { %v160_v9 = vmax.f32 %v144_v7, 0.0  ;;  %479 = vmatprep.mubr.bf16.mxu1 %v192_v5  ;;  %v130_v10 = vpop.permute.xlu1 %129 }
  0x9e   :  { %v125_v11 = vpop.permute.xlu0 %124  ;;  %v153_v13 = vadd.f32 %v426_v25, %v130_v10 }
  0x9f   :  { %v189_v12 = vpack.c.bf16 %v161_v8, %v160_v9  ;;  %v152_v14 = vadd.f32 %v426_v25, %v125_v11 }
  0xa0   :  { %v169_v15 = vmax.f32 %v153_v13, 0.0 }
  0xa1   :  { %v168_v16 = vmax.f32 %v152_v14, 0.0  ;;  %472 = vmatmul.mubr.bf16.gmra.mrb[4].mxu0 %v189_v12 }
  0xa3   :  { %v193_v17 = vpack.c.bf16 %v169_v15, %v168_v16 }
  0xa5   :  { %480 = vmatmul.mubr.bf16.gmra.mrb[4].mxu1 %v193_v17 }
 0x164   :  { %v469_v18 = vpop.f32.mrb[0].mxu0 }
 0x165   :  { %408 = vst [vmem:[%s657_s3 + $0x10] sm:$0xff] %v469_v18  ;;  %v292_v19 = vpop.f32.mrb[1].mxu0 }
 0x166   :  { %406 = vst [vmem:[%s657_s3] sm:$0xff] %v292_v19  ;;  %v470_v20 = vpop.f32.mrb[2].mxu0 }
 0x167   :  { %409 = vst [vmem:[%s657_s3 + $0x18] sm:$0xff] %v470_v20  ;;  %v295_v21 = vpop.f32.mrb[3].mxu0 }
 0x168   :  { %407 = vst [vmem:[%s657_s3 + $0x8] sm:$0xff] %v295_v21  ;;  %v477_v22 = vpop.f32.mrb[0].mxu1 }
 0x169   :  { %416 = vst [vmem:[%s657_s3 + $0x50] sm:$0xff] %v477_v22  ;;  %v324_v23 = vpop.f32.mrb[1].mxu1 }
 0x16a   :  { %414 = vst [vmem:[%s657_s3 + $0x40] sm:$0xff] %v324_v23  ;;  %v478_v24 = vpop.f32.mrb[2].mxu1 }
 0x16b   :  { %417 = vst [vmem:[%s657_s3 + $0x58] sm:$0xff] %v478_v24  ;;  %v327_v25 = vpop.f32.mrb[3].mxu1 }
 0x16c   :  { %415 = vst [vmem:[%s657_s3 + $0x48] sm:$0xff] %v327_v25 }
 0x174   :  { %v473_v26 = vpop.f32.mrb[4].mxu0 }
 0x175   :  { %412 = vst [vmem:[%s657_s3 + $0x30] sm:$0xff] %v473_v26  ;;  %v308_v27 = vpop.f32.mrb[5].mxu0 }
 0x176   :  { %410 = vst [vmem:[%s657_s3 + $0x20] sm:$0xff] %v308_v27  ;;  %v474_v28 = vpop.f32.mrb[6].mxu0 }
 0x177   :  { %413 = vst [vmem:[%s657_s3 + $0x38] sm:$0xff] %v474_v28  ;;  %v311_v29 = vpop.f32.mrb[7].mxu0 }
 0x178   :  { %411 = vst [vmem:[%s657_s3 + $0x28] sm:$0xff] %v311_v29  ;;  %v481_v30 = vpop.f32.mrb[4].mxu1 }
 0x179   :  { %420 = vst [vmem:[%s657_s3 + $0x70] sm:$0xff] %v481_v30  ;;  %v340_v31 = vpop.f32.mrb[5].mxu1 }
 0x17a   :  { %418 = vst [vmem:[%s657_s3 + $0x60] sm:$0xff] %v340_v31  ;;  %v482_v32 = vpop.f32.mrb[6].mxu1 }
 0x17b   :  { %421 = vst [vmem:[%s657_s3 + $0x78] sm:$0xff] %v482_v32  ;;  %v343_v33 = vpop.f32.mrb[7].mxu1 }
 0x17c   :  { %419 = vst [vmem:[%s657_s3 + $0x68] sm:$0xff] %v343_v33 }

</bundles_post_ra>
